<compile_context>
chip_gen: v6e
topology: v6e:2x2x1
jax: 0.10.0
libtpu: 0.0.40
codegen_flags: <defaults>
</compile_context>

<pallas_src>
import functools
import math

import jax
import jax.numpy as jnp
from jax.experimental import pallas as pl
from jax.experimental.pallas import tpu as pltpu


def _round_up(v, m):
    return (v + m - 1) // m * m


def _shrink(y, shrinkage, threshold):
    """Elementwise shrinkage, same formula as the PyTorch module."""
    if shrinkage is None:
        return y
    if shrinkage == "soft":
        a = jnp.abs(y)
        return jnp.sign(y) * (a - threshold + jnp.abs(a - threshold)) * 0.5
    if shrinkage == "hard":
        return y * (jnp.abs(y) > threshold).astype(y.dtype)
    raise ValueError("Shrinkage type is invalid")


# ----------------------------- kernels ---------------------------------------
def _stage1_kernel(dc_ref, xw_ref, filt_ref, y_ref, acc_ref, *,
                   shrinkage, threshold):
    """Grid (m, c):  acc[m] += Dc[m, c] @ xw[c];
    at c == last:    y[m] = filter[m] * shrink(acc[m])   (stored as bf16)."""
    c = pl.program_id(1)

    @pl.when(c == 0)
    def _init():
        acc_ref[...] = jnp.zeros_like(acc_ref)

    acc_ref[...] += jnp.dot(dc_ref[...], xw_ref[...],
                            preferred_element_type=jnp.float32)

    @pl.when(c == pl.num_programs(1) - 1)
    def _finalize():
        y = _shrink(acc_ref[...], shrinkage, threshold)
        y_ref[...] = (filt_ref[...] * y).astype(y_ref.dtype)


def _stage2_kernel(d2_ref, y_ref, bias_ref, o_ref, acc_ref):
    """Grid (i, k):  acc[i] (init = bias at k == 0) += D2[i, k] @ y[k];
    lane-dense store at k == last."""
    k = pl.program_id(1)

    @pl.when(k == 0)
    def _init():
        acc_ref[...] = jnp.zeros_like(acc_ref) + bias_ref[...]   # bias folded in

    acc_ref[...] += jnp.dot(d2_ref[...], y_ref[...],
                            preferred_element_type=jnp.float32)

    @pl.when(k == pl.num_programs(1) - 1)
    def _finalize():
        o_ref[...] = acc_ref[...].astype(o_ref.dtype)


# --------------------------- tiling helpers ----------------------------------
def _vmem_budget():
    """Generation-aware (v5e/v6e: 128 MiB, v7x: 64 MiB) VMEM budget + limit."""
    try:
        info = pltpu.get_tpu_info()
        cap = int(getattr(info, "vmem_capacity_bytes", 0)) or 64 * 1024 * 1024
    except Exception:
        cap = 64 * 1024 * 1024                       # conservative fallback
    budget = int(cap * 0.45)                         # streamed working set
    limit = max(32 * 1024 * 1024, min(int(cap * 0.75), 100 * 1024 * 1024))
    return budget, limit


def _pick_tile(dim, cap):
    """Largest multiple of 128 <= cap that minimizes the padded extent of dim."""
    dim128 = _round_up(max(int(dim), 1), 128)
    cap = max(128, min(int(cap), dim128))
    best, best_pad = 128, _round_up(dim128, 128)
    t = 128
    while t <= cap:
        pad = _round_up(dim128, t)
        if pad < best_pad or (pad == best_pad and t > best):
            best, best_pad = t, pad
        t += 128
    return best


def _choose_tiles(n, mn, fp, budget_bytes, cap=1024):
    """(TN, TMN). TN tiles the node axis (stage-2 rows / stage-1 contraction);
    TMN tiles the framelet-row axis (stage-1 rows / stage-2 contraction).
    Both stages' double-buffered working sets are guarded against the budget."""
    tn = _pick_tile(n, cap)
    tmn = _pick_tile(mn, cap)

    def cost(tn, tmn):
        # stage 1: Dc/xw/y tiles (bf16, 2 bufs) + f32 acc + filter column
        s1 = (2 * tmn * tn + 2 * tn * fp + 2 * tmn * fp) * 2 \
             + tmn * fp * 4 + 2 * tmn * 4
        # stage 2: D2/y tiles (bf16, 2 bufs) + f32 acc + f32 out (2 bufs) + bias
        s2 = (2 * tn * tmn + 2 * tmn * fp) * 2 \
             + (tn * fp + 2 * tn * fp + 2 * fp) * 4
        return max(s1, s2)

    while cost(tn, tmn) > budget_bytes and max(tn, tmn) > 128:
        if tn >= tmn:
            tn = _pick_tile(n, max(128, (tn // 2) // 128 * 128))
        else:
            tmn = _pick_tile(mn, max(128, (tmn // 2) // 128 * 128))
    return tn, tmn


# ------------------------------ forward --------------------------------------
def ufgconv_forward(x, d_list, weight, filt, bias=None, *, Lev,
                    shrinkage=None, threshold=1e-4, tile_cap=1024):
    """Pallas implementation of UFGConv.forward (d_list as dense matrices)."""
    if shrinkage not in (None, "soft", "hard"):
        raise ValueError("Shrinkage type is invalid")

    f32, bf16 = jnp.float32, jnp.bfloat16
    N = x.shape[0]
    Fout = weight.shape[1]
    crop_len = (Lev - 1) * N

    # --- wrapper-side prep: tiny xw matmul in XLA; big operators stay bf16 ---
    xw = jnp.dot(x.astype(f32), weight.astype(f32))                    # [N, Fout]
    dc = jnp.concatenate([d.astype(bf16) for d in d_list[Lev - 1:]], axis=0)  # [MN, N]
    d2 = jnp.concatenate([d.astype(bf16) for d in d_list[Lev - 1:]], axis=1)  # [N, MN]
    filt_c = filt[crop_len:].reshape(-1, 1).astype(f32)                # [MN, 1]
    MN = dc.shape[0]
    if bias is None:
        bias = jnp.zeros((Fout,), dtype=f32)

    # --- padding & generation-aware tiling ------------------------------------
    Fp = _round_up(Fout, 128)                 # lane-dense output / MXU columns
    budget, vmem_limit = _vmem_budget()
    TN, TMN = _choose_tiles(N, MN, Fp, budget, cap=tile_cap)
    N_pad = _round_up(N, TN)
    MN_pad = _round_up(MN, TMN)

    def _pad(a, shape, dtype):
        return jnp.pad(a.astype(dtype),
                       [(0, s - d) for d, s in zip(a.shape, shape)])

    xw_p = _pad(xw, (N_pad, Fp), bf16)
    dc_p = _pad(dc, (MN_pad, N_pad), bf16)
    d2_p = _pad(d2, (N_pad, MN_pad), bf16)
    filt_p = _pad(filt_c, (MN_pad, 1), f32)
    bias_p = _pad(bias.reshape(1, Fout), (1, Fp), f32)

    params = pltpu.CompilerParams(
        dimension_semantics=("parallel", "arbitrary"),
        vmem_limit_bytes=vmem_limit)

    # --- stage 1:  y = filter * shrink( cat(d_list[Lev-1:], 0) @ (x @ W) ) ---
    y_p = pl.pallas_call(
        functools.partial(_stage1_kernel, shrinkage=shrinkage,
                          threshold=threshold),
        out_shape=jax.ShapeDtypeStruct((MN_pad, Fp), bf16),
        grid=(MN_pad // TMN, N_pad // TN),
        in_specs=[
            pl.BlockSpec((TMN, TN), lambda m, c: (m, c)),   # Dc, streamed once
            pl.BlockSpec((TN, Fp),  lambda m, c: (c, 0)),   # xw (small)
            pl.BlockSpec((TMN, 1),  lambda m, c: (m, 0)),   # filter column
        ],
        out_specs=pl.BlockSpec((TMN, Fp), lambda m, c: (m, 0)),
        scratch_shapes=[pltpu.VMEM((TMN, Fp), jnp.float32)],
        compiler_params=params,
        cost_estimate=pl.CostEstimate(
            flops=2 * MN_pad * N_pad * Fp,
            transcendentals=0,
            bytes_accessed=(MN_pad * N_pad + N_pad * Fp + MN_pad * Fp) * 2),
    )(dc_p, xw_p, filt_p)

    # --- stage 2:  out = cat(d_list[Lev-1:], 1) @ y + bias --------------------
    out = pl.pallas_call(
        _stage2_kernel,
        out_shape=jax.ShapeDtypeStruct((N_pad, Fp), f32),
        grid=(N_pad // TN, MN_pad // TMN),
        in_specs=[
            pl.BlockSpec((TN, TMN), lambda i, k: (i, k)),   # D2, streamed once
            pl.BlockSpec((TMN, Fp), lambda i, k: (k, 0)),   # y from stage 1
            pl.BlockSpec((1, Fp),   lambda i, k: (0, 0)),   # bias
        ],
        out_specs=pl.BlockSpec((TN, Fp), lambda i, k: (i, 0)),
        scratch_shapes=[pltpu.VMEM((TN, Fp), jnp.float32)],
        compiler_params=params,
        cost_estimate=pl.CostEstimate(
            flops=2 * N_pad * MN_pad * Fp,
            transcendentals=0,
            bytes_accessed=(N_pad * MN_pad + MN_pad * Fp) * 2 + N_pad * Fp * 4),
    )(d2_p, y_p, bias_p)

    return out[:N, :Fout]


# ----------------------------- references -------------------------------------
def _reference_f32(x, d_list, weight, filt, bias, Lev,
                   shrinkage=None, threshold=1e-4):
    """Pure-JAX f32 reference mirroring the PyTorch code exactly."""
    N = x.shape[0]
    crop_len = (Lev - 1) * N
    xw = x @ weight
    y = jnp.concatenate(d_list, axis=0) @ xw
    y = _shrink(y, shrinkage, threshold)
    y = filt * y
    out = jnp.concatenate(d_list[Lev - 1:], axis=1) @ y[crop_len:, :]
    return out + bias


def _reference_bf16_mirror(x, d_list, weight, filt, bias, Lev,
                           shrinkage=None, threshold=1e-4):
    """Reference using the same bf16 casts / f32 accumulation as the kernels."""
    f32, bf16 = jnp.float32, jnp.bfloat16
    N = x.shape[0]
    crop_len = (Lev - 1) * N
    xw = jnp.dot(x.astype(f32), weight.astype(f32)).astype(bf16)
    dc = jnp.concatenate([d.astype(bf16) for d in d_list[Lev - 1:]], axis=0)
    d2 = jnp.concatenate([d.astype(bf16) for d in d_list[Lev - 1:]], axis=1)
    y = jnp.dot(dc, xw, preferred_element_type=f32)
    y = (_shrink(y, shrinkage, threshold)
         * filt[crop_len:].reshape(-1, 1).astype(f32)).astype(bf16)
    out = jnp.dot(d2, y, preferred_element_type=f32)
    return out + bias.astype(f32)[None, :]


if __name__ == "__main__":
    # small deterministic setup
    num_nodes = 384
    in_features = 64
    out_features = 32
    r = 2
    Lev = 2
    dtype = jnp.float32

    key = jax.random.PRNGKey(0)
    k_x, k_w, k_f, k_d = jax.random.split(key, 4)

    x = jax.random.normal(k_x, (num_nodes, in_features), dtype=dtype)

    # dense stand-ins for the sparse framelet decomposition operators
    d_keys = jax.random.split(k_d, r * Lev)
    d_list = [0.1 * jax.random.normal(k, (num_nodes, num_nodes), dtype=dtype)
              for k in d_keys]

    # parameters, matching UFGConv.reset_parameters deterministically:
    #   weight: xavier_uniform, filter: uniform(0.9, 1.1), bias: zeros
    bound = math.sqrt(6.0 / (in_features + out_features))
    weight = jax.random.uniform(k_w, (in_features, out_features),
                                minval=-bound, maxval=bound, dtype=dtype)
    filt = jax.random.uniform(k_f, (r * Lev * num_nodes, 1),
                              minval=0.9, maxval=1.1, dtype=dtype)
    bias = jnp.zeros((out_features,), dtype=dtype)

    ref = _reference_f32(x, d_list, weight, filt, bias, Lev)
    mirror = _reference_bf16_mirror(x, d_list, weight, filt, bias, Lev)

    # default path (shrinkage=None), auto-chosen (large) tiles
    out = jax.block_until_ready(
        ufgconv_forward(x, d_list, weight, filt, bias, Lev=Lev))
    assert out.shape == (num_nodes, out_features)
    assert jnp.allclose(out, mirror, atol=1e-2, rtol=1e-2), \
        float(jnp.max(jnp.abs(out - mirror)))
    rel = float(jnp.linalg.norm(out - ref) / jnp.linalg.norm(ref))
    assert rel < 2e-2, rel

    # small tiles -> multi-tile grids on both axes of both stages
    out_t = jax.block_until_ready(
        ufgconv_forward(x, d_list, weight, filt, bias, Lev=Lev, tile_cap=128))
    assert jnp.allclose(out_t, mirror, atol=1e-2, rtol=1e-2), \
        float(jnp.max(jnp.abs(out_t - mirror)))

    # soft-shrinkage path
    out_s = jax.block_until_ready(
        ufgconv_forward(x, d_list, weight, filt, bias, Lev=Lev,
                        shrinkage="soft", threshold=1e-3))
    mirror_s = _reference_bf16_mirror(x, d_list, weight, filt, bias, Lev,
                                      shrinkage="soft", threshold=1e-3)
    assert jnp.allclose(out_s, mirror_s, atol=1e-2, rtol=1e-2)

    # hard-shrinkage path
    out_h = jax.block_until_ready(
        ufgconv_forward(x, d_list, weight, filt, bias, Lev=Lev,
                        shrinkage="hard", threshold=1e-3))
    mirror_h = _reference_bf16_mirror(x, d_list, weight, filt, bias, Lev,
                                      shrinkage="hard", threshold=1e-3)
    assert jnp.allclose(out_h, mirror_h, atol=1e-2, rtol=1e-2)

    print("KERNEL_OK")
</pallas_src>

<mosaic_0001>
module attributes {stable_mosaic.version = 11 : i64} {
  func.func @_stage1_kernel(%arg0: i32, %arg1: i32, %arg2: memref<384x384xbf16, #tpu.memory_space<vmem>>, %arg3: memref<384x128xbf16, #tpu.memory_space<vmem>>, %arg4: memref<384x1xf32, #tpu.memory_space<vmem>>, %arg5: memref<384x128xbf16, #tpu.memory_space<vmem>>, %arg6: memref<384x128xf32, #tpu.memory_space<vmem>>) attributes {dimension_semantics = [#tpu.dimension_semantics<parallel>, #tpu.dimension_semantics<arbitrary>], iteration_bounds = array<i64: 3, 1>, scalar_prefetch = 0 : i64, scratch_operands = 1 : i64, tpu.core_type = #tpu.core_type<tc>, window_params = [{transform_indices = @transform_0, window_bounds = array<i64: 384, 384>}, {transform_indices = @transform_1, window_bounds = array<i64: 384, 128>}, {transform_indices = @transform_2, window_bounds = array<i64: 384, 1>}, {transform_indices = @transform_3, window_bounds = array<i64: 384, 128>}]} {
    %c0_i32 = arith.constant 0 : i32
    %0 = arith.cmpi eq, %arg1, %c0_i32 : i32
    %1 = arith.extui %0 : i1 to i32
    %c0_i32_0 = arith.constant 0 : i32
    %2 = arith.cmpi ne, %1, %c0_i32_0 : i32
    scf.if %2 {
      %cst_10 = arith.constant 0.000000e+00 : f32
      %12 = vector.broadcast %cst_10 : f32 to vector<384x128xf32>
      %c0_11 = arith.constant 0 : index
      %c0_12 = arith.constant 0 : index
      %13 = vector.load %arg6[%c0_11, %c0_12] : memref<384x128xf32, #tpu.memory_space<vmem>>, vector<384x128xf32>
      tpu.vector_store %arg6[%c0_11, %c0_12], %12 {strides = array<i32>} : memref<384x128xf32, #tpu.memory_space<vmem>>, vector<384x128xf32>,
    } else {
    }
    %c0 = arith.constant 0 : index
    %c0_1 = arith.constant 0 : index
    %3 = vector.load %arg6[%c0, %c0_1] : memref<384x128xf32, #tpu.memory_space<vmem>>, vector<384x128xf32>
    %c0_2 = arith.constant 0 : index
    %c0_3 = arith.constant 0 : index
    %4 = vector.load %arg2[%c0_2, %c0_3] : memref<384x384xbf16, #tpu.memory_space<vmem>>, vector<384x384xbf16>
    %c0_4 = arith.constant 0 : index
    %c0_5 = arith.constant 0 : index
    %5 = vector.load %arg3[%c0_4, %c0_5] : memref<384x128xbf16, #tpu.memory_space<vmem>>, vector<384x128xbf16>
    %cst = arith.constant dense<0.000000e+00> : vector<384x128xf32>
    %6 = tpu.matmul %4, %5, %cst {dimension_numbers = #tpu.dot_dimension_numbers<[1], [0], [0], [1], [0, 0, 1, 1], [], []>} : vector<384x384xbf16>, vector<384x128xbf16>, vector<384x128xf32> -> vector<384x128xf32>
    %7 = arith.addf %3, %6 : vector<384x128xf32>
    %c0_6 = arith.constant 0 : index
    %c0_7 = arith.constant 0 : index
    %8 = vector.load %arg6[%c0_6, %c0_7] : memref<384x128xf32, #tpu.memory_space<vmem>>, vector<384x128xf32>
    tpu.vector_store %arg6[%c0_6, %c0_7], %7 {strides = array<i32>} : memref<384x128xf32, #tpu.memory_space<vmem>>, vector<384x128xf32>,
    %c0_i32_8 = arith.constant 0 : i32
    %9 = arith.cmpi eq, %arg1, %c0_i32_8 : i32
    %10 = arith.extui %9 : i1 to i32
    %c0_i32_9 = arith.constant 0 : i32
    %11 = arith.cmpi ne, %10, %c0_i32_9 : i32
    scf.if %11 {
      %c0_10 = arith.constant 0 : index
      %c0_11 = arith.constant 0 : index
      %12 = vector.load %arg6[%c0_10, %c0_11] : memref<384x128xf32, #tpu.memory_space<vmem>>, vector<384x128xf32>
      %c0_12 = arith.constant 0 : index
      %c0_13 = arith.constant 0 : index
      %13 = vector.load %arg4[%c0_12, %c0_13] : memref<384x1xf32, #tpu.memory_space<vmem>>, vector<384x1xf32>
      %14 = vector.broadcast %13 : vector<384x1xf32> to vector<384x128xf32>
      %15 = arith.mulf %14, %12 : vector<384x128xf32>
      %16 = arith.truncf %15 : vector<384x128xf32> to vector<384x128xbf16>
      %c0_14 = arith.constant 0 : index
      %c0_15 = arith.constant 0 : index
      %17 = vector.load %arg5[%c0_14, %c0_15] : memref<384x128xbf16, #tpu.memory_space<vmem>>, vector<384x128xbf16>
      tpu.vector_store %arg5[%c0_14, %c0_15], %16 {strides = array<i32>} : memref<384x128xbf16, #tpu.memory_space<vmem>>, vector<384x128xbf16>,
    } else {
    }
    return
  }
  func.func @transform_0(%arg0: i32, %arg1: i32) -> (i32, i32) {
    %c0_i32 = arith.constant 0 : i32
    return %arg0, %arg1 : i32, i32
  }
  func.func @transform_1(%arg0: i32, %arg1: i32) -> (i32, i32) {
    %c0_i32 = arith.constant 0 : i32
    %c0_i32_0 = arith.constant 0 : i32
    return %arg1, %c0_i32 : i32, i32
  }
  func.func @transform_2(%arg0: i32, %arg1: i32) -> (i32, i32) {
    %c0_i32 = arith.constant 0 : i32
    %c0_i32_0 = arith.constant 0 : i32
    return %arg0, %c0_i32 : i32, i32
  }
  func.func @transform_3(%arg0: i32, %arg1: i32) -> (i32, i32) {
    %c0_i32 = arith.constant 0 : i32
    %c0_i32_0 = arith.constant 0 : i32
    return %arg0, %c0_i32 : i32, i32
  }
}

</mosaic_0001>

<bundles_post_ra>
// kernel: tpu_custom_call.1
= control target key start
LH: loop header
LB: loop body
LE: loop exit
PB: predicated region body
PF: predicated region fallthrough
CT: control target
= control target key end

     0   :  { %8 = vsyncpa [#allocation4], 0  ;;  %s3711_s0 = inlined_call_operand.hbm [shape: bf16[1152,384], index: 0, kind: input, shape index: {}]   ;;  %s3712_s1 = inlined_call_operand.vmem [shape: bf16[384,128], index: 1, kind: input, shape index: {}]   ;;  %s3713_s2 = inlined_call_operand.vmem [shape: f32[1152,1], index: 2, kind: input, shape index: {}]   ;;  %s3714_s3 = inlined_call_operand.hbm [shape: bf16[1152,128], index: 3, kind: output, shape index: {}]  }
   0x1   :  { %10 = vsyncpa [#allocation4 + $0x1], 0 }
   0x2   :  { %11 = vsyncpa [#allocation5], 0 }
   0x3   :  { %13 = vsyncpa [#allocation5 + $0x1], 0  ;;  %s3130_s12 = smov 0   ;;  %s3132_s13 = smov 0  }
   0x4   :  { %s3134_s14 = smov 0   ;;  %s3136_s15 = smov 0  }
   0x5   :  { %s3138_s16 = smov 0   ;;  %s3140_s17 = smov 0  }
   0x6 LB: > { %s2324_s18 = sadd.s32 4294967295, %s3101_s17   ;;  %s2325_s19 = sadd.s32 4294967294, %s3101_s17   ;;  %s3101_s17 = sphi %s3140_s17, %s19_s17   ;;  %s3097_s16 = sphi %s3138_s16, %s3724_s16   ;;  %s3093_s15 = sphi %s3136_s15, %s3723_s15   ;;  %s3089_s14 = sphi %s3134_s14, %s3722_s14   ;;  %s3085_s13 = sphi %s3132_s13, %s3721_s13   ;;  %s3081_s12 = sphi %s3130_s12, %s3720_s12  }
   0x7   : > { %s31_s20 = sadd.s32 1, %s3097_s16  ;;  %s40_s21 = sadd.s32 1, %s3089_s14 }
   0x8   : > { %p33_p0 = scmp.ge.s32.totalorder %s31_s20, 3  ;;  %p47_p1 = scmp.ne.s32.totalorder %s3089_s14, %s3085_s13 }
   0x9   : > { %p48_p2 = scmp.eq.s32.totalorder %s3101_s17, 0  ;;  %p53_p3 = scmp.ne.s32.totalorder %s3085_s13, %s3081_s12 }
   0xa   : > { %s3726_s20 = smov (%p33_p0, %s31_s20), 0  ;;  %p54_p5 = scmp.eq.s32.totalorder %s2324_s18, 0 }
   0xb   : > { %p3171_p4 = por %p48_p2, %p47_p1  ;;  %s35_s23 = ssub.s32 %s3097_s16, %s3726_s20 }
   0xc   : > { %p129_p6 = scmp.eq.s32.totalorder %s2324_s18, 2  ;;  %p38_p7 = scmp.eq.s32.totalorder %s35_s23, 0 }
   0xd   : > { %p3177_p8 = por %p54_p5, %p53_p3  ;;  %p135_p10 = scmp.eq.s32.totalorder %s2325_s19, 2 }
   0xe   : > { %p3181_p9 = por %p129_p6, %p47_p1  ;;  %p2815_p12 = scmp.lt.s32.totalorder %s3101_s17, 3 }
   0xf   : > { %s3186_s26 = scalar_select %p38_p7, %s3089_s14, %s40_s21  }
  0x10   : > { %p3188_p11 = por %p135_p10, %p53_p3  ;;  %s164_s28 = sand.u32 1, %s3089_s14  }
  0x11   : > { %s2799_s29 = smul.u32 576, %s164_s28  ;;  %p3196_p13 = pnand %p2815_p12, %p3171_p4 }
  0x12   : > { %s2816_s4 = smul.u32 9216, %s3097_s16  ;;  %s165_s10 = scalar_lea.sflag [#allocation4], %s164_s28 }
  0x13   : > { %s168_s5 = scalar_lea.vmem [#allocation3], %s2799_s29  ;;  %p2995_p0 = pneg %p3196_p13 }
  0x14   : > { %s178_s6 = sshll.u32 %s168_s5, 4  ;;  %s177_s9 = scalar_lea.hbm %s3711_s0, %s2816_s4  ;;  %s179_s6 = int_to_ptr.vmem [resolvable:$true] %s178_s6 }
  0x15   : > { %s3006_s11 = scalar_lea.vmem %s179_s6, 9216  ;;  %s3103_s18 = smov [#allocation3]  }
  0x16   : > { %p3007_p1 = scmp.ne.s32.totalorder %s179_s6, %s3006_s11  ;;  %s3011_s19 = sshll.u32 %s3103_s18, 4  ;;  %s3012_s19 = int_to_ptr.vmem [resolvable:$false] %s3011_s19 }
  0x17   : > { %s3013_s21 = scalar_lea.vmem %s3012_s19, 18432  ;;  %p3014_p4 = scmp.lt.s32.totalorder %s179_s6, %s3012_s19 }
  0x18   : > { %p3009_p2 = pnand %p3007_p1, %p2995_p0  ;;  %p3015_p5 = scmp.lt.s32.totalorder %s3013_s21, %s3006_s11 }
  0x1a   : > { %p3010_p3 = pneg %p3009_p2  ;;  %p3016_p6 = por %p3015_p5, %p3014_p4 }
  0x1c   : > { %p3017_p7 = pnand %p3016_p6, %p3010_p3 }
  0x1e   : > { %3020 = shalt.err (!%p3017_p7)
}
  0x1f   : > { %s3104_s22 = smov 192   ;;  %s3105_s23 = smov 12  }
  0x20   : > { %2810 = dma.hbm_to_vmem [thread:$0]  (!%p3196_p13), %s177_s9, 9216, %s179_s6, %s165_s10, %s3104_s22, %s3104_s22, %s3105_s23  }
  0x21   : > { %p2330_p10 = scmp.ge.s32.totalorder %s3101_s17, 1  ;;  %p195_p12 = scmp.lt.s32.totalorder %s3101_s17, 4 }
  0x23   : > { %p196_p0 = pnand %p2330_p10, %p195_p12 }
  0x24   : > { %s3211_s28 = sand.u32 (!%p196_p0), 1, %s3085_s13  }
  0x25   : > { %199 = sbr.rel (%p196_p0) target bundleno = 464 (0x1d0), region = 32  ;;  %s202_s4 = scalar_lea.sflag (!%p196_p0), [#allocation4], %s3211_s28 }
  0x26   : > { %s2801_s29 = smul.u32 (!%p196_p0), 576, %s3211_s28 }
  0x28   : > { %s3215_s5 = scalar_lea.vmem (!%p196_p0), [#allocation3], %s2801_s29 }
  0x2a   : > { %3072 = dma.done.wait (%p3177_p8), %s202_s4, 9216  }
  0x2b   : > { %3074 = vsyncadd (%p3177_p8), %s202_s4, 4294958080  ;;  %v3106_v0 = vmov 0   ;;  %v2873_v1 = vld [vmem:[%s3712_s1 + $0x38] sm:$0xff]   ;;  %v2874_v2 = vld [vmem:[%s3712_s1 + $0x30] sm:$0xff]   ;;  %s246_s18 = smul.u32 48, %s3093_s15  ;;  %s3107_s6 = smov [#allocation6]  }
  0x2c   : > { %1026 = vmatprep.subr.bf16.mxu0 %v3106_v0  ;;  %2767 = vmatprep.subr.bf16.mxu1 %v3106_v0  ;;  %v2875_v3 = vld [vmem:[%s3712_s1 + $0x28] sm:$0xff]   ;;  %v2876_v4 = vld [vmem:[%s3712_s1 + $0x20] sm:$0xff]   ;;  %v2877_v5 = vld [vmem:[%s3712_s1 + $0x18] sm:$0xff]   ;;  %s2527_s21 = smul.u32 3072, %s3093_s15  ;;  %s2200_s15 = scalar_lea.sflag [#allocation5], %s3211_s28 }
  0x2d   : > { %2872 = vset.pattern.permute.xlu1 %v3106_v0  ;;  %2871 = vset.pattern.permute.xlu0 %v3106_v0  ;;  %v2891_v6 = vld [vmem:[%s3215_s5 + $0x4] ss:$12 sps:$4 sm:$0xff]   ;;  %p247_p8 = scmp.lt.s32.totalorder %s246_s18, 143  ;;  %v2894_v8 = vld [vmem:[%s3215_s5 + $0x1b4] ss:$12 sps:$4 sm:$0xff]   ;;  %v2879_v9 = vld [vmem:[%s3712_s1 + $0x8] sm:$0xff]  }
  0x2e   : > { %1027 = vmatpush1.bf16.msra.mxu0 %v2873_v1  ;;  %2783 = vmatpush1.bf16.msra.mxu1 %v2873_v1  ;;  %v2878_v7 = vld [vmem:[%s3712_s1 + $0x10] sm:$0xff]   ;;  %v2880_v10 = vld [vmem:[%s3712_s1] sm:$0xff]   ;;  %v2881_v11 = vld [vmem:[%s3712_s1 + $0x78] sm:$0xff]   ;;  %s3659_s4 = scalar_lea.hbm %s3714_s3, %s2527_s21  ;;  %s3025_s7 = sshll.u32 %s3107_s6, 4  ;;  %s3026_s7 = int_to_ptr.vmem [resolvable:$false] %s3025_s7 }
  0x2f   : > { %1028 = vmatprep.subr.bf16.mxu0 %v3106_v0  ;;  %2768 = vmatprep.subr.bf16.mxu1 %v3106_v0  ;;  %s3728_s18 = smov (!%p247_p8, %s246_s18), 143  ;;  %v2882_v14 = vld [vmem:[%s3712_s1 + $0x70] sm:$0xff]   ;;  %v2883_v17 = vld [vmem:[%s3712_s1 + $0x68] sm:$0xff]   ;;  %v2884_v20 = vld [vmem:[%s3712_s1 + $0x60] sm:$0xff]   ;;  %s3027_s8 = scalar_lea.vmem %s3026_s7, 6144 }
  0x30   : > { %1058 = vmatprep.mubr.bf16.mxu0 %v2891_v6  ;;  %1202 = vmatprep.mubr.bf16.mxu1 %v2894_v8  ;;  %s2331_s30 = sshll.u32 %s3728_s18, 3  ;;  %v2885_v23 = vld [vmem:[%s3712_s1 + $0x58] sm:$0xff]   ;;  %v2886_v26 = vld [vmem:[%s3712_s1 + $0x50] sm:$0xff]   ;;  %v2887_v29 = vld [vmem:[%s3712_s1 + $0x48] sm:$0xff]  }
  0x31   : > { %s3269_s9 = scalar_lea.vmem %s3713_s2, %s2331_s30  ;;  %v2888_v32 = vld [vmem:[%s3712_s1 + $0x40] sm:$0xff]   ;;  %v2895_v35 = vld [vmem:[%s3712_s1 + $0xb8] sm:$0xff]   ;;  %v2896_v38 = vld [vmem:[%s3712_s1 + $0xb0] sm:$0xff]  }
  0x32   : > { %1029 = vmatpush1.bf16.msra.mxu0 %v2874_v2  ;;  %2784 = vmatpush1.bf16.msra.mxu1 %v2874_v2  ;;  %v1625_v12 = vld [vmem:[%s3269_s9 + $0x10] sm:$0xff]  ;;  %v1623_v13 = vld [vmem:[%s3269_s9] sm:$0xff]  ;;  %v1626_v15 = vld [vmem:[%s3269_s9 + $0x18] sm:$0xff] }
  0x33   : > { %1030 = vmatprep.subr.bf16.mxu0 %v3106_v0  ;;  %2769 = vmatprep.subr.bf16.mxu1 %v3106_v0  ;;  %v1624_v16 = vld [vmem:[%s3269_s9 + $0x8] sm:$0xff]  ;;  %v1627_v19 = vld [vmem:[%s3269_s9 + $0x20] sm:$0xff]  ;;  %v1630_v21 = vld [vmem:[%s3269_s9 + $0x38] sm:$0xff] }
  0x34   : > { %1683 = vperm.xlu1 %2872, %v1625_v12   ;;  %1673 = vperm.xlu0 %2871, %v1623_v13   ;;  %v1628_v18 = vld [vmem:[%s3269_s9 + $0x28] sm:$0xff]  ;;  %v1629_v22 = vld [vmem:[%s3269_s9 + $0x30] sm:$0xff]  ;;  %v1631_v25 = vld [vmem:[%s3269_s9 + $0x40] sm:$0xff] }
  0x35   : > { %v1632_v24 = vld [vmem:[%s3269_s9 + $0x48] sm:$0xff]  ;;  %v1634_v27 = vld [vmem:[%s3269_s9 + $0x58] sm:$0xff]  ;;  %v1633_v28 = vld [vmem:[%s3269_s9 + $0x50] sm:$0xff] }
  0x36   : > { %1031 = vmatpush1.bf16.msra.mxu0 %v2875_v3  ;;  %2785 = vmatpush1.bf16.msra.mxu1 %v2875_v3  ;;  %v1636_v30 = vld [vmem:[%s3269_s9 + $0x68] sm:$0xff]  ;;  %v1635_v31 = vld [vmem:[%s3269_s9 + $0x60] sm:$0xff]  ;;  %v1638_v33 = vld [vmem:[%s3269_s9 + $0x78] sm:$0xff] }
  0x37   : > { %1032 = vmatprep.subr.bf16.mxu0 %v3106_v0  ;;  %2770 = vmatprep.subr.bf16.mxu1 %v3106_v0  ;;  %v1637_v34 = vld [vmem:[%s3269_s9 + $0x70] sm:$0xff]  ;;  %v2889_v36 = vld [vmem:[%s3215_s5] ss:$12 sps:$4 sm:$0xff]   ;;  %v2897_v39 = vld [vmem:[%s3215_s5 + $0x1c] ss:$12 sps:$4 sm:$0xff]  }
  0x38   : > { %1688 = vperm.xlu1 %2872, %v1626_v15   ;;  %1678 = vperm.xlu0 %2871, %v1624_v16   ;;  %v2892_v37 = vld [vmem:[%s3215_s5 + $0x1b0] ss:$12 sps:$4 sm:$0xff]   ;;  %v2899_v40 = vld [vmem:[%s3215_s5 + $0x1cc] ss:$12 sps:$4 sm:$0xff]   ;;  %v1639_v42 = vld [vmem:[%s3269_s9 + $0x80] sm:$0xff] }
  0x39   : > { %v1640_v41 = vld [vmem:[%s3269_s9 + $0x88] sm:$0xff]  ;;  %v2901_v43 = vld [vmem:[%s3215_s5 + $0x18] ss:$12 sps:$4 sm:$0xff]   ;;  %v1641_v47 = vld [vmem:[%s3269_s9 + $0x90] sm:$0xff] }
  0x3a   : > { %1033 = vmatpush1.bf16.msra.mxu0 %v2876_v4  ;;  %2786 = vmatpush1.bf16.msra.mxu1 %v2876_v4  ;;  %v2903_v44 = vld [vmem:[%s3712_s1 + $0xa8] sm:$0xff]   ;;  %v1642_v46 = vld [vmem:[%s3269_s9 + $0x98] sm:$0xff]  ;;  %v2904_v48 = vld [vmem:[%s3215_s5 + $0x34] ss:$12 sps:$4 sm:$0xff]  }
  0x3b   : > { %1034 = vmatprep.subr.bf16.mxu0 %v3106_v0  ;;  %2771 = vmatprep.subr.bf16.mxu1 %v3106_v0  ;;  %v2902_v45 = vld [vmem:[%s3215_s5 + $0x1c8] ss:$12 sps:$4 sm:$0xff]   ;;  %v2906_v49 = vld [vmem:[%s3215_s5 + $0x1e4] ss:$12 sps:$4 sm:$0xff]   ;;  %v2909_v54 = vld [vmem:[%s3215_s5 + $0x1e0] ss:$12 sps:$4 sm:$0xff]  }
  0x3c   : > { %1698 = vperm.xlu1 %2872, %v1628_v18   ;;  %1693 = vperm.xlu0 %2871, %v1627_v19   ;;  %v2910_v50 = vld [vmem:[%s3712_s1 + $0xa0] sm:$0xff]   ;;  %v1644_v51 = vld [vmem:[%s3269_s9 + $0xa8] sm:$0xff]  ;;  %v2908_v53 = vld [vmem:[%s3215_s5 + $0x30] ss:$12 sps:$4 sm:$0xff]  }
  0x3d   : > { %v1643_v52 = vld [vmem:[%s3269_s9 + $0xa0] sm:$0xff]  ;;  %v2917_v55 = vld [vmem:[%s3712_s1 + $0x98] sm:$0xff]   ;;  %v1645_v58 = vld [vmem:[%s3269_s9 + $0xb0] sm:$0xff] }
  0x3e   : > { %1035 = vmatpush1.bf16.msra.mxu0 %v2877_v5  ;;  %2787 = vmatpush1.bf16.msra.mxu1 %v2877_v5  ;;  %v2911_v56 = vld [vmem:[%s3215_s5 + $0x4c] ss:$12 sps:$4 sm:$0xff]   ;;  %v2913_v59 = vld [vmem:[%s3215_s5 + $0x1fc] ss:$12 sps:$4 sm:$0xff]   ;;  %v2918_v60 = vld [vmem:[%s3712_s1 + $0x90] sm:$0xff]  }
  0x3f   : > { %1036 = vmatprep.subr.bf16.mxu0 %v3106_v0  ;;  %2772 = vmatprep.subr.bf16.mxu1 %v3106_v0  ;;  %v1646_v57 = vld [vmem:[%s3269_s9 + $0xb8] sm:$0xff]  ;;  %v1648_v61 = vld [vmem:[%s3269_s9 + $0xc8] sm:$0xff]  ;;  %v1647_v62 = vld [vmem:[%s3269_s9 + $0xc0] sm:$0xff] }
  0x40   : > { %1708 = vperm.xlu1 %2872, %v1630_v21   ;;  %1703 = vperm.xlu0 %2871, %v1629_v22   ;;  %v2915_v63 = vld [vmem:[%s3215_s5 + $0x48] ss:$12 sps:$4 sm:$0xff]   ;;  %v2919_v1 = vld [vmem:[%s3215_s5 + $0x64] ss:$12 sps:$4 sm:$0xff]   ;;  %v1650_v3 = vld [vmem:[%s3269_s9 + $0xd8] sm:$0xff] }
  0x41   : > { %v2925_v2 = vld [vmem:[%s3712_s1 + $0x88] sm:$0xff]   ;;  %v2921_v4 = vld [vmem:[%s3215_s5 + $0x214] ss:$12 sps:$4 sm:$0xff]   ;;  %v1658_v19 = vld [vmem:[%s3269_s9 + $0x118] sm:$0xff] }
  0x42   : > { %1037 = vmatpush1.bf16.msra.mxu0 %v2878_v7  ;;  %2788 = vmatpush1.bf16.msra.mxu1 %v2878_v7  ;;  %v2932_v5 = vld [vmem:[%s3712_s1 + $0x80] sm:$0xff]   ;;  %v1649_v6 = vld [vmem:[%s3269_s9 + $0xd0] sm:$0xff]  ;;  %v1652_v7 = vld [vmem:[%s3269_s9 + $0xe8] sm:$0xff] }
  0x43   : > { %1038 = vmatprep.subr.bf16.mxu0 %v3106_v0  ;;  %2773 = vmatprep.subr.bf16.mxu1 %v3106_v0  ;;  %v2923_v8 = vld [vmem:[%s3215_s5 + $0x60] ss:$12 sps:$4 sm:$0xff]   ;;  %v2926_v12 = vld [vmem:[%s3215_s5 + $0x7c] ss:$12 sps:$4 sm:$0xff]   ;;  %v1657_v22 = vld [vmem:[%s3269_s9 + $0x110] sm:$0xff] }
  0x44   : > { %1718 = vperm.xlu1 %2872, %v1632_v24   ;;  %1713 = vperm.xlu0 %2871, %v1631_v25   ;;  %v2928_v13 = vld [vmem:[%s3215_s5 + $0x22c] ss:$12 sps:$4 sm:$0xff]   ;;  %v1655_v16 = vld [vmem:[%s3269_s9 + $0x100] sm:$0xff]  ;;  %v2931_v18 = vld [vmem:[%s3215_s5 + $0x228] ss:$12 sps:$4 sm:$0xff]  }
  0x45   : > { %v1656_v15 = vld [vmem:[%s3269_s9 + $0x108] sm:$0xff]  ;;  %v1659_v24 = vld [vmem:[%s3269_s9 + $0x120] sm:$0xff]  ;;  %v2936_v25 = vld [vmem:[%s3215_s5 + $0x90] ss:$12 sps:$4 sm:$0xff]  }
  0x46   : > { %1039 = vmatpush1.bf16.msra.mxu0 %v2879_v9  ;;  %2789 = vmatpush1.bf16.msra.mxu1 %v2879_v9  ;;  %v2924_v9 = vld [vmem:[%s3215_s5 + $0x210] ss:$12 sps:$4 sm:$0xff]   ;;  %v2935_v21 = vld [vmem:[%s3215_s5 + $0x8] ss:$12 sps:$4 sm:$0xff]  }
  0x47   : > { %1040 = vmatprep.subr.bf16.mxu0 %v3106_v0  ;;  %2774 = vmatprep.subr.bf16.mxu1 %v3106_v0 }
  0x48   : > { %1728 = vperm.xlu1 %2872, %v1634_v27   ;;  %1723 = vperm.xlu0 %2871, %v1633_v28   ;;  %v1662_v27 = vld [vmem:[%s3269_s9 + $0x138] sm:$0xff] }
  0x49   : > { %v2938_v28 = vld [vmem:[%s3215_s5 + $0xac] ss:$12 sps:$4 sm:$0xff]  }
  0x4a   : > { %1041 = vmatpush1.bf16.msra.mxu0 %v2880_v10  ;;  %2790 = vmatpush1.bf16.msra.mxu1 %v2880_v10  ;;  %v1651_v10 = vld [vmem:[%s3269_s9 + $0xe0] sm:$0xff] }
  0x4b   : > { %1042 = vmatprep.subr.bf16.mxu0 %v3106_v0  ;;  %2775 = vmatprep.subr.bf16.mxu1 %v3106_v0 }
  0x4c   : > { %1738 = vperm.xlu1 %2872, %v1636_v30   ;;  %1733 = vperm.xlu0 %2871, %v1635_v31   ;;  %v1661_v30 = vld [vmem:[%s3269_s9 + $0x130] sm:$0xff]  ;;  %v1664_v31 = vld [vmem:[%s3269_s9 + $0x148] sm:$0xff] }
  0x4e   : > { %1043 = vmatpush2.bf16.msra.mxu0 %v2881_v11  ;;  %2791 = vmatpush2.bf16.msra.mxu1 %v2881_v11  ;;  %v1654_v11 = vld [vmem:[%s3269_s9 + $0xf8] sm:$0xff] }
  0x4f   : > { %1044 = vmatprep.subr.bf16.mxu0 %v3106_v0  ;;  %2776 = vmatprep.subr.bf16.mxu1 %v3106_v0 }
  0x50   : > { %1748 = vperm.xlu1 %2872, %v1638_v33   ;;  %1743 = vperm.xlu0 %2871, %v1637_v34   ;;  %v2941_v33 = vld [vmem:[%s3215_s5 + $0xa8] ss:$12 sps:$4 sm:$0xff]   ;;  %v2942_v34 = vld [vmem:[%s3215_s5 + $0x50] ss:$12 sps:$4 sm:$0xff]  }
  0x52   : > { %1045 = vmatpush2.bf16.msra.mxu0 %v2882_v14  ;;  %2792 = vmatpush2.bf16.msra.mxu1 %v2882_v14  ;;  %v1653_v14 = vld [vmem:[%s3269_s9 + $0xf0] sm:$0xff] }
  0x53   : > { %1046 = vmatprep.subr.bf16.mxu0 %v3106_v0  ;;  %2777 = vmatprep.subr.bf16.mxu1 %v3106_v0 }
  0x54   : > { %1758 = vperm.xlu1 %2872, %v1640_v41   ;;  %1753 = vperm.xlu0 %2871, %v1639_v42   ;;  %v2946_v41 = vld [vmem:[%s3215_s5 + $0xc0] ss:$12 sps:$4 sm:$0xff]  }
  0x55   : > { %v2947_v42 = vld [vmem:[%s3215_s5 + $0x80] ss:$12 sps:$4 sm:$0xff]  }
  0x56   : > { %1047 = vmatpush2.bf16.msra.mxu0 %v2883_v17  ;;  %2793 = vmatpush2.bf16.msra.mxu1 %v2883_v17  ;;  %v2930_v17 = vld [vmem:[%s3215_s5 + $0x78] ss:$12 sps:$4 sm:$0xff]  }
  0x57   : > { %1048 = vmatprep.subr.bf16.mxu0 %v3106_v0  ;;  %2778 = vmatprep.subr.bf16.mxu1 %v3106_v0 }
  0x58   : > { %1768 = vperm.xlu1 %2872, %v1642_v46   ;;  %1763 = vperm.xlu0 %2871, %v1641_v47   ;;  %v1669_v46 = vld [vmem:[%s3269_s9 + $0x170] sm:$0xff]  ;;  %v2951_v47 = vld [vmem:[%s3215_s5 + $0xd8] ss:$12 sps:$4 sm:$0xff]  }
  0x5a   : > { %1049 = vmatpush2.bf16.msra.mxu0 %v2884_v20  ;;  %2794 = vmatpush2.bf16.msra.mxu1 %v2884_v20  ;;  %v2933_v20 = vld [vmem:[%s3215_s5 + $0x94] ss:$12 sps:$4 sm:$0xff]  }
  0x5b   : > { %1050 = vmatprep.subr.bf16.mxu0 %v3106_v0  ;;  %2779 = vmatprep.subr.bf16.mxu1 %v3106_v0 }
  0x5c   : > { %1778 = vperm.xlu1 %2872, %v1644_v51   ;;  %1773 = vperm.xlu0 %2871, %v1643_v52   ;;  %v2956_v51 = vld [vmem:[%s3215_s5 + $0xf0] ss:$12 sps:$4 sm:$0xff]   ;;  %v2957_v52 = vld [vmem:[%s3215_s5 + $0xe0] ss:$12 sps:$4 sm:$0xff]  }
  0x5e   : > { %1051 = vmatpush2.bf16.msra.mxu0 %v2885_v23  ;;  %2795 = vmatpush2.bf16.msra.mxu1 %v2885_v23  ;;  %v1660_v23 = vld [vmem:[%s3269_s9 + $0x128] sm:$0xff] }
  0x5f   : > { %1052 = vmatprep.subr.bf16.mxu0 %v3106_v0  ;;  %2780 = vmatprep.subr.bf16.mxu1 %v3106_v0 }
  0x60   : > { %1788 = vperm.xlu1 %2872, %v1646_v57   ;;  %1783 = vperm.xlu0 %2871, %v1645_v58   ;;  %v2963_v57 = vld [vmem:[%s3215_s5 + $0x124] ss:$12 sps:$4 sm:$0xff]   ;;  %v2965_v58 = vld [vmem:[%s3215_s5 + $0x128] ss:$12 sps:$4 sm:$0xff]  }
  0x62   : > { %1053 = vmatpush2.bf16.msra.mxu0 %v2886_v26  ;;  %2796 = vmatpush2.bf16.msra.mxu1 %v2886_v26  ;;  %v2937_v26 = vld [vmem:[%s3215_s5 + $0x20] ss:$12 sps:$4 sm:$0xff]  }
  0x63   : > { %1054 = vmatprep.subr.bf16.mxu0 %v3106_v0  ;;  %2781 = vmatprep.subr.bf16.mxu1 %v3106_v0 }
  0x64   : > { %1798 = vperm.xlu1 %2872, %v1648_v61   ;;  %1793 = vperm.xlu0 %2871, %v1647_v62   ;;  %v2968_v61 = vld [vmem:[%s3215_s5 + $0x13c] ss:$12 sps:$4 sm:$0xff]   ;;  %v2970_v62 = vld [vmem:[%s3215_s5 + $0x158] ss:$12 sps:$4 sm:$0xff]  }
  0x66   : > { %1055 = vmatpush2.bf16.msra.mxu0 %v2887_v29  ;;  %2797 = vmatpush2.bf16.msra.mxu1 %v2887_v29  ;;  %v2940_v29 = vld [vmem:[%s3215_s5 + $0x38] ss:$12 sps:$4 sm:$0xff]  }
  0x67   : > { %1056 = vmatprep.subr.bf16.mxu0 %v3106_v0  ;;  %2782 = vmatprep.subr.bf16.mxu1 %v3106_v0  ;;  %v2916_v0 = vld [vmem:[%s3215_s5 + $0x1f8] ss:$12 sps:$4 sm:$0xff]  }
  0x68   : > { %1808 = vperm.xlu1 %2872, %v1650_v3   ;;  %1803 = vperm.xlu0 %2871, %v1649_v6   ;;  %v2976_v3 = vld [vmem:[%s3215_s5 + $0x150] ss:$12 sps:$4 sm:$0xff]   ;;  %v2980_v6 = vld [vmem:[%s3215_s5 + $0x1b8] ss:$12 sps:$4 sm:$0xff]  }
  0x6a   : > { %1057 = vmatpush2.bf16.msra.mxu0 %v2888_v32  ;;  %2798 = vmatpush2.bf16.msra.mxu1 %v2888_v32  ;;  %v1663_v32 = vld [vmem:[%s3269_s9 + $0x140] sm:$0xff] }
  0x6b   : > { %2703 = vmatprep.subr.bf16.mxu1 %v2895_v35 }
  0x6c   : > { %1818 = vperm.xlu1 %2872, %v1652_v7   ;;  %1813 = vperm.xlu0 %2871, %v1651_v10   ;;  %v2981_v7 = vld [vmem:[%s3215_s5 + $0x168] ss:$12 sps:$4 sm:$0xff]  }
  0x6d   : > { %1059 = vmatmul.mubr.bf16.vlgmr.msra.gmra.mxu0 %v2889_v36  ;;  %1203 = vmatmul.mubr.bf16.vlgmr.msra.gmra.mxu1 %v2892_v37  ;;  %v2943_v36 = vld [vmem:[%s3215_s5 + $0xc4] ss:$12 sps:$4 sm:$0xff]   ;;  %v2945_v37 = vld [vmem:[%s3215_s5 + $0x68] ss:$12 sps:$4 sm:$0xff]  }
  0x6e   : > { %2704 = vmatpush3.bf16.msra.mxu1 %v2895_v35  ;;  %1066 = vmatprep.mubr.bf16.mxu0 %v2897_v39  ;;  %v1666_v35 = vld [vmem:[%s3269_s9 + $0x158] sm:$0xff]  ;;  %v1668_v39 = vld [vmem:[%s3269_s9 + $0x168] sm:$0xff] }
  0x6f   : > { %2705 = vmatprep.subr.bf16.mxu1 %v2896_v38  ;;  %1210 = vmatprep.mubr.bf16.mxu1 %v2899_v40  ;;  %v1667_v40 = vld [vmem:[%s3269_s9 + $0x160] sm:$0xff]  ;;  %v2985_v10 = vld [vmem:[%s3215_s5 + $0x1e8] ss:$12 sps:$4 sm:$0xff]  }
  0x70   : > { %1828 = vperm.xlu1 %2872, %v1654_v11   ;;  %1823 = vperm.xlu0 %2871, %v1653_v14   ;;  %v2986_v11 = vld [vmem:[%s3215_s5 + $0x180] ss:$12 sps:$4 sm:$0xff]   ;;  %v2990_v14 = vld [vmem:[%s3215_s5 + $0x218] ss:$12 sps:$4 sm:$0xff]  }
  0x72   : > { %2706 = vmatpush3.bf16.msra.mxu1 %v2896_v38  ;;  %v1665_v38 = vld [vmem:[%s3269_s9 + $0x150] sm:$0xff] }
  0x73   : > { %2707 = vmatprep.subr.bf16.mxu1 %v2903_v44 }
  0x74   : > { %1838 = vperm.xlu1 %2872, %v1656_v15   ;;  %1833 = vperm.xlu0 %2871, %v1655_v16   ;;  %v2991_v15 = vld [vmem:[%s3215_s5 + $0x198] ss:$12 sps:$4 sm:$0xff]   ;;  %v2992_v16 = vld [vmem:[%s3215_s5 + $0x230] ss:$12 sps:$4 sm:$0xff]  }
  0x75   : > { %1067 = vmatmul.mubr.bf16.gmra.mxu0 %v2901_v43  ;;  %1211 = vmatmul.mubr.bf16.gmra.mxu1 %v2902_v45  ;;  %v1670_v43 = vld [vmem:[%s3269_s9 + $0x178] sm:$0xff] }
  0x76   : > { %2708 = vmatpush3.bf16.msra.mxu1 %v2903_v44  ;;  %1074 = vmatprep.mubr.bf16.mxu0 %v2904_v48  ;;  %v2948_v44 = vld [vmem:[%s3215_s5 + $0xdc] ss:$12 sps:$4 sm:$0xff]   ;;  %v2950_v45 = vld [vmem:[%s3215_s5 + $0x98] ss:$12 sps:$4 sm:$0xff]  }
  0x77   : > { %1218 = vmatprep.mubr.bf16.mxu1 %v2906_v49  ;;  %2709 = vmatprep.subr.bf16.mxu1 %v2910_v50  ;;  %v2952_v48 = vld [vmem:[%s3215_s5 + $0xb0] ss:$12 sps:$4 sm:$0xff]   ;;  %v2953_v49 = vld [vmem:[%s3215_s5 + $0xf4] ss:$12 sps:$4 sm:$0xff]  }
  0x78   : > { %1848 = vperm.xlu1 %2872, %v1658_v19   ;;  %1843 = vperm.xlu0 %2871, %v1657_v22  }
  0x7a   : > { %2710 = vmatpush3.bf16.msra.mxu1 %v2910_v50  ;;  %v2955_v50 = vld [vmem:[%s3215_s5 + $0xc8] ss:$12 sps:$4 sm:$0xff]  }
  0x7b   : > { %2711 = vmatprep.subr.bf16.mxu1 %v2917_v55 }
  0x7c   : > { %1858 = vperm.xlu1 %2872, %v1660_v23   ;;  %1853 = vperm.xlu0 %2871, %v1659_v24  }
  0x7d   : > { %1075 = vmatmul.mubr.bf16.gmra.mxu0 %v2908_v53  ;;  %1219 = vmatmul.mubr.bf16.gmra.mxu1 %v2909_v54  ;;  %v2958_v53 = vld [vmem:[%s3215_s5 + $0x10c] ss:$12 sps:$4 sm:$0xff]  }
  0x7e   : > { %1082 = vmatprep.mubr.bf16.mxu0 %v2911_v56  ;;  %1226 = vmatprep.mubr.bf16.mxu1 %v2913_v59  ;;  %v2960_v54 = vld [vmem:[%s3215_s5 + $0xf8] ss:$12 sps:$4 sm:$0xff]   ;;  %v2962_v56 = vld [vmem:[%s3215_s5 + $0x110] ss:$12 sps:$4 sm:$0xff]   ;;  %v2966_v59 = vld [vmem:[%s3215_s5 + $0x120] ss:$12 sps:$4 sm:$0xff]  }
  0x7f   : > { %2712 = vmatpush3.bf16.msra.mxu1 %v2917_v55  ;;  %v2961_v55 = vld [vmem:[%s3215_s5 + $0x108] ss:$12 sps:$4 sm:$0xff]  }
  0x80   : > { %2713 = vmatprep.subr.bf16.mxu1 %v2918_v60  ;;  %1868 = vperm.xlu1 %2872, %v1662_v27  }
  0x81   : > { %1863 = vperm.xlu0 %2871, %v1661_v30  }
  0x83   : > { %2714 = vmatpush3.bf16.msra.mxu1 %v2918_v60  ;;  %v2967_v60 = vld [vmem:[%s3215_s5 + $0x140] ss:$12 sps:$4 sm:$0xff]  }
  0x84   : > { %2715 = vmatprep.subr.bf16.mxu1 %v2925_v2  ;;  %1878 = vperm.xlu1 %2872, %v1664_v31  }
  0x85   : > { %1083 = vmatmul.mubr.bf16.gmra.mxu0 %v2915_v63  ;;  %1227 = vmatmul.mubr.bf16.gmra.mxu1 %v2916_v0  ;;  %v2971_v63 = vld [vmem:[%s3215_s5 + $0x138] ss:$12 sps:$4 sm:$0xff]   ;;  %v2972_v0 = vld [vmem:[%s3215_s5 + $0x170] ss:$12 sps:$4 sm:$0xff]  }
  0x86   : > { %1090 = vmatprep.mubr.bf16.mxu0 %v2919_v1  ;;  %1234 = vmatprep.mubr.bf16.mxu1 %v2921_v4  ;;  %v2973_v1 = vld [vmem:[%s3215_s5 + $0x154] ss:$12 sps:$4 sm:$0xff]  }
  0x87   : > { %2716 = vmatpush3.bf16.msra.mxu1 %v2925_v2  ;;  %1873 = vperm.xlu0 %2871, %v1663_v32   ;;  %v2975_v2 = vld [vmem:[%s3215_s5 + $0x188] ss:$12 sps:$4 sm:$0xff]   ;;  %v2977_v4 = vld [vmem:[%s3215_s5 + $0x1a0] ss:$12 sps:$4 sm:$0xff]  }
  0x88   : > { %2717 = vmatprep.subr.bf16.mxu1 %v2932_v5  ;;  %1888 = vperm.xlu1 %2872, %v1666_v35  }
  0x8b   : > { %2718 = vmatpush3.bf16.msra.mxu1 %v2932_v5  ;;  %1883 = vperm.xlu0 %2871, %v1665_v38   ;;  %v2978_v5 = vld [vmem:[%s3215_s5 + $0x16c] ss:$12 sps:$4 sm:$0xff]  }
  0x8c   : > { %1898 = vperm.xlu1 %2872, %v1668_v39  }
  0x8d   : > { %1091 = vmatmul.mubr.bf16.gmra.mxu0 %v2923_v8  ;;  %1235 = vmatmul.mubr.bf16.gmra.mxu1 %v2924_v9  ;;  %v2982_v8 = vld [vmem:[%s3215_s5 + $0x1d0] ss:$12 sps:$4 sm:$0xff]  }
  0x8e   : > { %1098 = vmatprep.mubr.bf16.mxu0 %v2926_v12  ;;  %1242 = vmatprep.mubr.bf16.mxu1 %v2928_v13  ;;  %v2983_v9 = vld [vmem:[%s3215_s5 + $0x184] ss:$12 sps:$4 sm:$0xff]   ;;  %v2987_v12 = vld [vmem:[%s3215_s5 + $0x200] ss:$12 sps:$4 sm:$0xff]   ;;  %v2988_v13 = vld [vmem:[%s3215_s5 + $0x19c] ss:$12 sps:$4 sm:$0xff]  }
  0x8f   : > { %1893 = vperm.xlu0 %2871, %v1667_v40   ;;  %s2802_s5 = smul.u32 192, %s3211_s28 }
  0x90   : > { %1908 = vperm.xlu1 %2872, %v1670_v43  }
  0x91   : > { %s3542_s9 = scalar_lea.vmem [#allocation6], %s2802_s5 }
  0x92   : > { %s2213_s22 = sshll.u32 %s3542_s9, 4  ;;  %s3661_s22 = int_to_ptr.vmem [resolvable:$true] %s2213_s22 }
  0x93   : > { %1903 = vperm.xlu0 %2871, %v1669_v46   ;;  %s3021_s30 = scalar_lea.vmem %s3661_s22, 3072  ;;  %p3028_p3 = scmp.lt.s32.totalorder %s3661_s22, %s3026_s7 }
  0x94   : > { %p3022_p13 = scmp.ne.s32.totalorder %s3661_s22, %s3021_s30  ;;  %p3029_p4 = scmp.lt.s32.totalorder %s3027_s8, %s3021_s30 }
  0x95   : > { %1099 = vmatmul.mubr.bf16.gmra.mxu0 %v2930_v17  ;;  %1243 = vmatmul.mubr.bf16.gmra.mxu1 %v2931_v18 }
  0x96   : > { %1106 = vmatprep.mubr.bf16.mxu0 %v2933_v20  ;;  %2719 = vmatprep.mubr.bf16.mxu1 %v2935_v21  ;;  %p3023_p1 = pnand %p3022_p13, %p3181_p9  ;;  %p3030_p5 = por %p3029_p4, %p3028_p3 }
  0x98   : > { %p3024_p2 = pneg %p3023_p1 }
  0x9a   : > { %p3031_p6 = pnand %p3030_p5, %p3024_p2 }
  0x9d   : > { %1107 = vmatmul.mubr.bf16.gmra.mxu0 %v2936_v25  ;;  %2720 = vmatmul.mubr.bf16.vlgmr.msra.gmra.mxu1 %v2937_v26 }
  0x9e   : > { %1114 = vmatprep.mubr.bf16.mxu0 %v2938_v28  ;;  %2723 = vmatprep.mubr.bf16.mxu1 %v2940_v29 }
  0xa5   : > { %1115 = vmatmul.mubr.bf16.gmra.mxu0 %v2941_v33  ;;  %2724 = vmatmul.mubr.bf16.gmra.mxu1 %v2942_v34 }
  0xa6   : > { %1122 = vmatprep.mubr.bf16.mxu0 %v2943_v36  ;;  %2727 = vmatprep.mubr.bf16.mxu1 %v2945_v37 }
  0xad   : > { %1123 = vmatmul.mubr.bf16.gmra.mxu0 %v2946_v41  ;;  %2728 = vmatmul.mubr.bf16.gmra.mxu1 %v2947_v42 }
  0xae   : > { %1130 = vmatprep.mubr.bf16.mxu0 %v2948_v44  ;;  %2731 = vmatprep.mubr.bf16.mxu1 %v2950_v45 }
  0xaf   : > { %v3457_v21 = vpop.permute.xlu1 %1683  ;;  %v3459_v22 = vpop.permute.xlu0 %1673 }
  0xb3   : > { %v3467_v29 = vpop.permute.xlu1 %1688  ;;  %v3469_v30 = vpop.permute.xlu0 %1678 }
  0xb5   : > { %1131 = vmatmul.mubr.bf16.gmra.mxu0 %v2951_v47  ;;  %2732 = vmatmul.mubr.bf16.gmra.mxu1 %v2952_v48 }
  0xb6   : > { %1138 = vmatprep.mubr.bf16.mxu0 %v2953_v49  ;;  %2735 = vmatprep.mubr.bf16.mxu1 %v2955_v50 }
  0xb7   : > { %v3473_v37 = vpop.permute.xlu1 %1698  ;;  %v3475_v38 = vpop.permute.xlu0 %1693 }
  0xbb   : > { %v3485_v45 = vpop.permute.xlu1 %1708  ;;  %v3487_v46 = vpop.permute.xlu0 %1703 }
  0xbd   : > { %1139 = vmatmul.mubr.bf16.gmra.mxu0 %v2956_v51  ;;  %2736 = vmatmul.mubr.bf16.gmra.mxu1 %v2957_v52 }
  0xbe   : > { %1146 = vmatprep.mubr.bf16.mxu0 %v2958_v53  ;;  %2739 = vmatprep.mubr.bf16.mxu1 %v2960_v54 }
  0xbf   : > { %v3491_v53 = vpop.permute.xlu1 %1718  ;;  %v3493_v54 = vpop.permute.xlu0 %1713 }
  0xc5   : > { %1147 = vmatmul.mubr.bf16.gmra.mxu0 %v2961_v55  ;;  %2740 = vmatmul.mubr.bf16.gmra.mxu1 %v2962_v56 }
  0xc6   : > { %1154 = vmatprep.mubr.bf16.mxu0 %v2963_v57  ;;  %2743 = vmatprep.mubr.bf16.mxu1 %v2965_v58 }
  0xcd   : > { %1155 = vmatmul.mubr.bf16.gmra.mxu0 %v2966_v59  ;;  %2744 = vmatmul.mubr.bf16.gmra.mxu1 %v2967_v60 }
  0xce   : > { %1162 = vmatprep.mubr.bf16.mxu0 %v2968_v61  ;;  %2747 = vmatprep.mubr.bf16.mxu1 %v2970_v62  ;;  %v3501_v61 = vpop.permute.xlu1 %1728  ;;  %v3503_v62 = vpop.permute.xlu0 %1723 }
  0xd5   : > { %1163 = vmatmul.mubr.bf16.gmra.mxu0 %v2971_v63  ;;  %2748 = vmatmul.mubr.bf16.gmra.mxu1 %v2972_v0 }
  0xd6   : > { %1170 = vmatprep.mubr.bf16.mxu0 %v2973_v1  ;;  %2751 = vmatprep.mubr.bf16.mxu1 %v2975_v2 }
  0xdd   : > { %1171 = vmatmul.mubr.bf16.gmra.mxu0 %v2976_v3  ;;  %2752 = vmatmul.mubr.bf16.gmra.mxu1 %v2977_v4 }
  0xde   : > { %1178 = vmatprep.mubr.bf16.mxu0 %v2978_v5  ;;  %2755 = vmatprep.mubr.bf16.mxu1 %v2980_v6  ;;  %v3509_v5 = vpop.permute.xlu1 %1738  ;;  %v3511_v6 = vpop.permute.xlu0 %1733 }
  0xe5   : > { %1179 = vmatmul.mubr.bf16.gmra.mxu0 %v2981_v7  ;;  %2756 = vmatmul.mubr.bf16.gmra.mxu1 %v2982_v8 }
  0xe6   : > { %1186 = vmatprep.mubr.bf16.mxu0 %v2983_v9  ;;  %2759 = vmatprep.mubr.bf16.mxu1 %v2985_v10 }
  0xed   : > { %1187 = vmatmul.mubr.bf16.gmra.mxu0 %v2986_v11  ;;  %2760 = vmatmul.mubr.bf16.gmra.mxu1 %v2987_v12 }
  0xee   : > { %1194 = vmatprep.mubr.bf16.mxu0 %v2988_v13  ;;  %2763 = vmatprep.mubr.bf16.mxu1 %v2990_v14  ;;  %v3519_v13 = vpop.permute.xlu1 %1748  ;;  %v3521_v14 = vpop.permute.xlu0 %1743 }
  0xf5   : > { %1195 = vmatmul.mubr.bf16.gmra.mxu0 %v2991_v15  ;;  %2764 = vmatmul.mubr.bf16.gmra.mxu1 %v2992_v16 }
 0x12d   : > { %v3453_v17 = vpop.f32.mrf.mxu0  ;;  %v3455_v18 = vpop.f32.mrf.mxu1 }
 0x12f   : > { %v1062_v19 = vpop.f32.mrf.mxu0  ;;  %v1206_v20 = vpop.f32.mrf.mxu1 }
 0x131   : > { %v3461_v23 = vpop.f32.mrf.mxu0  ;;  %v3463_v24 = vpop.f32.mrf.mxu1 }
 0x133   : > { %v1065_v25 = vpop.f32.mrf.mxu0  ;;  %v1209_v26 = vpop.f32.mrf.mxu1 }
 0x135   : > { %v1068_v27 = vpop.f32.mrf.mxu0  ;;  %v3465_v28 = vpop.f32.mrf.mxu1 }
 0x137   : > { %v1070_v31 = vpop.f32.mrf.mxu0  ;;  %v1214_v32 = vpop.f32.mrf.mxu1 }
 0x138   : > { %v3525_v31 = vpop.permute.xlu1 %1758  ;;  %v3527_v32 = vpop.permute.xlu0 %1753 }
 0x139   : > { %v1071_v33 = vpop.f32.mrf.mxu0  ;;  %v3471_v34 = vpop.f32.mrf.mxu1 }
 0x13b   : > { %v1073_v35 = vpop.f32.mrf.mxu0  ;;  %v1217_v36 = vpop.f32.mrf.mxu1 }
 0x13d   : > { %v3477_v39 = vpop.f32.mrf.mxu0  ;;  %v3479_v40 = vpop.f32.mrf.mxu1 }
 0x13f   : > { %v1078_v41 = vpop.f32.mrf.mxu0  ;;  %v1222_v42 = vpop.f32.mrf.mxu1 }
 0x141   : > { %v3481_v43 = vpop.f32.mrf.mxu0  ;;  %v3483_v44 = vpop.f32.mrf.mxu1 }
 0x143   : > { %v1081_v47 = vpop.f32.mrf.mxu0  ;;  %v1225_v48 = vpop.f32.mrf.mxu1 }
 0x145   : > { %v1084_v49 = vpop.f32.mrf.mxu0  ;;  %v3489_v50 = vpop.f32.mrf.mxu1 }
 0x147   : > { %v1086_v51 = vpop.f32.mrf.mxu0  ;;  %v1230_v52 = vpop.f32.mrf.mxu1 }
 0x149   : > { %v1087_v55 = vpop.f32.mrf.mxu0  ;;  %v3495_v56 = vpop.f32.mrf.mxu1 }
 0x14b   : > { %v1089_v57 = vpop.f32.mrf.mxu0  ;;  %v1233_v58 = vpop.f32.mrf.mxu1 }
 0x14d   : > { %v3497_v59 = vpop.f32.mrf.mxu0  ;;  %v3499_v60 = vpop.f32.mrf.mxu1 }
 0x14f   : > { %v1094_v63 = vpop.f32.mrf.mxu0  ;;  %v1238_v0 = vpop.f32.mrf.mxu1 }
 0x151   : > { %v3505_v1 = vpop.f32.mrf.mxu0  ;;  %v3507_v2 = vpop.f32.mrf.mxu1 }
 0x153   : > { %v1097_v3 = vpop.f32.mrf.mxu0  ;;  %v1241_v4 = vpop.f32.mrf.mxu1 }
 0x154   : > { %v3536_v3 = vpop.permute.xlu1 %1768 }
 0x155   : > { %v1100_v7 = vpop.f32.mrf.mxu0  ;;  %v3513_v8 = vpop.f32.mrf.mxu1 }
 0x157   : > { %v1102_v9 = vpop.f32.mrf.mxu0  ;;  %v1246_v10 = vpop.f32.mrf.mxu1 }
 0x159   : > { %v3515_v11 = vpop.f32.mrf.mxu0  ;;  %v3517_v12 = vpop.f32.mrf.mxu1 }
 0x15b   : > { %v1105_v15 = vpop.f32.mrf.mxu0  ;;  %v1249_v16 = vpop.f32.mrf.mxu1 }
 0x15d   : > { %v3523_v19 = vpop.f32.mrf.mxu0  ;;  %v2721_v20 = vpop.f32.mrf.mxu1 }
 0x15e   : > { %v1294_v35 = vadd.f32 %v2721_v20, %v1068_v27  ;;  %v3538_v27 = vpop.permute.xlu0 %1763 }
 0x15f   : > { %v1110_v25 = vpop.f32.mrf.mxu0  ;;  %v1285_v26 = vpop.f32.mrf.mxu1 }
 0x160   : > { %v1286_v42 = vadd.f32 %v1285_v26, %v3453_v17  ;;  %v1913_v52 = vmul.f32 %v3457_v21, %v1294_v35  ;;  %v3547_v26 = vpop.permute.xlu1 %1778 }
 0x161   : > { %v3529_v36 = vpop.f32.mrf.mxu0  ;;  %v2722_v41 = vpop.f32.mrf.mxu1 }
 0x162   : > { %v1297_v47 = vadd.f32 %v2722_v41, %v1071_v33  ;;  %v1911_v4 = vmul.f32 %v3459_v22, %v1286_v42 }
 0x163   : > { %v1113_v48 = vpop.f32.mrf.mxu0  ;;  %v1288_v51 = vpop.f32.mrf.mxu1 }
 0x164   : > { %v1914_v57 = vmul.f32 %v3467_v29, %v1297_v47  ;;  %v1289_v58 = vadd.f32 %v1288_v51, %v3461_v23 }
 0x165   : > { %v1116_v63 = vpop.f32.mrf.mxu0  ;;  %v2725_v0 = vpop.f32.mrf.mxu1 }
 0x166   : > { %v2536_v9 = vpack.c.bf16 %v1914_v57, %v1913_v52  ;;  %v1912_v17 = vmul.f32 %v3469_v30, %v1289_v58  ;;  %v1310_v23 = vadd.f32 %v2725_v0, %v1084_v49  ;;  %v3549_v30 = vpop.permute.xlu0 %1773 }
 0x167   : > { %v1118_v33 = vpop.f32.mrf.mxu0  ;;  %v1301_v10 = vpop.f32.mrf.mxu1 }
 0x168   : > { %2648 = vst [vmem:[%s3542_s9 + $0x8] sm:$0xff] %v2536_v9   ;;  %v2531_v21 = vpack.c.bf16 %v1912_v17, %v1911_v4  ;;  %v1302_v16 = vadd.f32 %v1301_v10, %v3477_v39  ;;  %v1917_v35 = vmul.f32 %v3487_v46, %v1310_v23  ;;  %v3557_v46 = vpop.permute.xlu1 %1788 }
 0x169   : > { %v1119_v29 = vpop.f32.mrf.mxu0  ;;  %v2726_v15 = vpop.f32.mrf.mxu1 }
 0x16a   : > { %2532 = vst [vmem:[%s3542_s9] sm:$0xff] %v2531_v21   ;;  %v1313_v20 = vadd.f32 %v2726_v15, %v1087_v55  ;;  %v1915_v48 = vmul.f32 %v3475_v38, %v1302_v16 }
 0x16b   : > { %v1121_v22 = vpop.f32.mrf.mxu0  ;;  %v1304_v25 = vpop.f32.mrf.mxu1 }
 0x16c   : > { %v1918_v41 = vmul.f32 %v3485_v45, %v1313_v20  ;;  %v1305_v49 = vadd.f32 %v1304_v25, %v3481_v43  ;;  %v3559_v45 = vpop.permute.xlu0 %1783  ;;  %v3569_v22 = vpop.permute.xlu1 %1798 }
 0x16d   : > { %v1124_v42 = vpop.f32.mrf.mxu0  ;;  %v2729_v47 = vpop.f32.mrf.mxu1 }
 0x16e   : > { %v2546_v39 = vpack.c.bf16 %v1918_v41, %v1917_v35  ;;  %v1916_v55 = vmul.f32 %v3473_v37, %v1305_v49  ;;  %v1326_v58 = vadd.f32 %v2729_v47, %v1100_v7 }
 0x16f   : > { %v1126_v51 = vpop.f32.mrf.mxu0  ;;  %v1317_v52 = vpop.f32.mrf.mxu1 }
 0x170   : > { %2650 = vst [vmem:[%s3542_s9 + $0x18] sm:$0xff] %v2546_v39   ;;  %v2541_v57 = vpack.c.bf16 %v1916_v55, %v1915_v48  ;;  %v1318_v43 = vadd.f32 %v1317_v52, %v3497_v59  ;;  %v1921_v37 = vmul.f32 %v3503_v62, %v1326_v58  ;;  %v3579_v51 = vpop.permute.xlu1 %1808 }
 0x171   : > { %v1127_v0 = vpop.f32.mrf.mxu0  ;;  %v2730_v4 = vpop.f32.mrf.mxu1 }
 0x172   : > { %2649 = vst [vmem:[%s3542_s9 + $0x10] sm:$0xff] %v2541_v57   ;;  %v1329_v38 = vadd.f32 %v2730_v4, %v3515_v11  ;;  %v1919_v23 = vmul.f32 %v3493_v54, %v1318_v43  ;;  %v3571_v11 = vpop.permute.xlu0 %1793 }
 0x173   : > { %v1129_v9 = vpop.f32.mrf.mxu0  ;;  %v1320_v17 = vpop.f32.mrf.mxu1 }
 0x174   : > { %v1922_v33 = vmul.f32 %v3501_v61, %v1329_v38  ;;  %v1321_v7 = vadd.f32 %v1320_v17, %v3505_v1 }
 0x175   : > { %v1132_v10 = vpop.f32.mrf.mxu0  ;;  %v2733_v21 = vpop.f32.mrf.mxu1 }
 0x176   : > { %v2556_v15 = vpack.c.bf16 %v1922_v33, %v1921_v37  ;;  %v1920_v16 = vmul.f32 %v3491_v53, %v1321_v7  ;;  %v1342_v25 = vadd.f32 %v2733_v21, %v1116_v63  ;;  %v3581_v63 = vpop.permute.xlu0 %1803  ;;  %v3587_v37 = vpop.permute.xlu1 %1818 }
 0x177   : > { %v1134_v59 = vpop.f32.mrf.mxu0  ;;  %v1333_v20 = vpop.f32.mrf.mxu1 }
 0x178   : > { %2652 = vst [vmem:[%s3542_s9 + $0x28] sm:$0xff] %v2556_v15   ;;  %v2551_v62 = vpack.c.bf16 %v1920_v16, %v1919_v23  ;;  %v1334_v1 = vadd.f32 %v1333_v20, %v3523_v19  ;;  %v1925_v53 = vmul.f32 %v3521_v14, %v1342_v25 }
 0x179   : > { %v1135_v61 = vpop.f32.mrf.mxu0  ;;  %v2734_v35 = vpop.f32.mrf.mxu1 }
 0x17a   : > { %2651 = vst [vmem:[%s3542_s9 + $0x20] sm:$0xff] %v2551_v62   ;;  %v1345_v41 = vadd.f32 %v2734_v35, %v1119_v29  ;;  %v1923_v52 = vmul.f32 %v3511_v6, %v1334_v1  ;;  %v3589_v33 = vpop.permute.xlu0 %1813  ;;  %v3596_v35 = vpop.permute.xlu1 %1828 }
 0x17b   : > { %v1137_v54 = vpop.f32.mrf.mxu0  ;;  %v1336_v49 = vpop.f32.mrf.mxu1 }
 0x17c   : > { %v1926_v47 = vmul.f32 %v3519_v13, %v1345_v41  ;;  %v1337_v48 = vadd.f32 %v1336_v49, %v3529_v36 }
 0x17d   : > { %v1140_v39 = vpop.f32.mrf.mxu0  ;;  %v2737_v55 = vpop.f32.mrf.mxu1 }
 0x17e   : > { %v2566_v19 = vpack.c.bf16 %v1926_v47, %v1925_v53  ;;  %v1924_v29 = vmul.f32 %v3509_v5, %v1337_v48  ;;  %v1358_v4 = vadd.f32 %v2737_v55, %v1132_v10 }
 0x17f   : > { %v1142_v57 = vpop.f32.mrf.mxu0  ;;  %v1349_v58 = vpop.f32.mrf.mxu1 }
 0x180   : > { %2654 = vst [vmem:[%s3542_s9 + $0x38] sm:$0xff] %v2566_v19   ;;  %v2561_v14 = vpack.c.bf16 %v1924_v29, %v1923_v52  ;;  %v1350_v36 = vadd.f32 %v1349_v58, %v1124_v42  ;;  %v1929_v6 = vmul.f32 %v3538_v27, %v1358_v4  ;;  %v3598_v27 = vpop.permute.xlu0 %1823 }
 0x181   : > { %v1143_v13 = vpop.f32.mrf.mxu0  ;;  %v2738_v43 = vpop.f32.mrf.mxu1 }
 0x182   : > { %2653 = vst [vmem:[%s3542_s9 + $0x30] sm:$0xff] %v2561_v14   ;;  %v1361_v38 = vadd.f32 %v2738_v43, %v1135_v61  ;;  %v1927_v23 = vmul.f32 %v3527_v32, %v1350_v36 }
 0x183   : > { %v1145_v9 = vpop.f32.mrf.mxu0  ;;  %v1352_v17 = vpop.f32.mrf.mxu1 }
 0x184   : > { %v1930_v5 = vmul.f32 %v3536_v3, %v1361_v38  ;;  %v1353_v7 = vadd.f32 %v1352_v17, %v1127_v0  ;;  %v3607_v29 = vpop.permute.xlu0 %1833 }
 0x185   : > { %v1148_v21 = vpop.f32.mrf.mxu0  ;;  %v2741_v10 = vpop.f32.mrf.mxu1 }
 0x186   : > { %v2576_v15 = vpack.c.bf16 %v1930_v5, %v1929_v6  ;;  %v1928_v42 = vmul.f32 %v3525_v31, %v1353_v7  ;;  %v1374_v62 = vadd.f32 %v2741_v10, %v1148_v21 }
 0x187   : > { %v1150_v16 = vpop.f32.mrf.mxu0  ;;  %v1365_v59 = vpop.f32.mrf.mxu1 }
 0x188   : > { %2656 = vst [vmem:[%s3542_s9 + $0x48] sm:$0xff] %v2576_v15   ;;  %v2571_v20 = vpack.c.bf16 %v1928_v42, %v1927_v23  ;;  %v1366_v3 = vadd.f32 %v1365_v59, %v1140_v39  ;;  %v1933_v41 = vmul.f32 %v3559_v45, %v1374_v62  ;;  %v3605_v39 = vpop.permute.xlu1 %1838 }
 0x189   : > { %v1151_v25 = vpop.f32.mrf.mxu0  ;;  %v2742_v61 = vpop.f32.mrf.mxu1 }
 0x18a   : > { %2655 = vst [vmem:[%s3542_s9 + $0x40] sm:$0xff] %v2571_v20   ;;  %v1377_v0 = vadd.f32 %v2742_v61, %v1151_v25  ;;  %v1931_v47 = vmul.f32 %v3549_v30, %v1366_v3 }
 0x18b   : > { %v1153_v1 = vpop.f32.mrf.mxu0  ;;  %v1368_v32 = vpop.f32.mrf.mxu1 }
 0x18c   : > { %v1934_v31 = vmul.f32 %v3557_v46, %v1377_v0  ;;  %v1369_v54 = vadd.f32 %v1368_v32, %v1143_v13  ;;  %v3611_v36 = vpop.permute.xlu1 %1848 }
 0x18d   : > { %v1156_v49 = vpop.f32.mrf.mxu0  ;;  %v2745_v53 = vpop.f32.mrf.mxu1 }
 0x18e   : > { %v2586_v48 = vpack.c.bf16 %v1934_v31, %v1933_v41  ;;  %v1932_v55 = vmul.f32 %v3547_v26, %v1369_v54  ;;  %v3613_v26 = vpop.permute.xlu0 %1843 }
 0x18f   : > { %v1158_v52 = vpop.f32.mrf.mxu0  ;;  %v1381_v19 = vpop.f32.mrf.mxu1 }
 0x190   : > { %2658 = vst [vmem:[%s3542_s9 + $0x58] sm:$0xff] %v2586_v48   ;;  %v2581_v57 = vpack.c.bf16 %v1932_v55, %v1931_v47  ;;  %v1382_v46 = vadd.f32 %v1381_v19, %v1156_v49  ;;  %v1859_v16 = vpop.permute.xlu1 %1858 }
 0x191   : > { %v1159_v45 = vpop.f32.mrf.mxu0  ;;  %v2746_v58 = vpop.f32.mrf.mxu1 }
 0x192   : > { %2657 = vst [vmem:[%s3542_s9 + $0x50] sm:$0xff] %v2581_v57   ;;  %v1935_v38 = vmul.f32 %v3571_v11, %v1382_v46  ;;  %v1854_v59 = vpop.permute.xlu0 %1853 }
 0x193   : > { %v1161_v14 = vpop.f32.mrf.mxu0  ;;  %v1384_v4 = vpop.f32.mrf.mxu1 }
 0x194   : > { %v1385_v13 = vadd.f32 %v1384_v4, %v1159_v45  ;;  %v1869_v41 = vpop.permute.xlu1 %1868 }
 0x195   : > { %v1164_v30 = vpop.f32.mrf.mxu0  ;;  %v2749_v43 = vpop.f32.mrf.mxu1 }
 0x196   : > { %v1936_v9 = vmul.f32 %v3569_v22, %v1385_v13  ;;  %v1390_v7 = vadd.f32 %v2745_v53, %v1164_v30  ;;  %v1864_v31 = vpop.permute.xlu0 %1863 }
 0x197   : > { %v1166_v17 = vpop.f32.mrf.mxu0  ;;  %v1397_v6 = vpop.f32.mrf.mxu1 }
 0x198   : > { %v2591_v5 = vpack.c.bf16 %v1936_v9, %v1935_v38  ;;  %v1937_v20 = vmul.f32 %v3581_v63, %v1390_v7  ;;  %v1879_v45 = vpop.permute.xlu1 %1878 }
 0x199   : > { %v1167_v21 = vpop.f32.mrf.mxu0  ;;  %v2750_v10 = vpop.f32.mrf.mxu1 }
 0x19a   : > { %2659 = vst [vmem:[%s3542_s9 + $0x60] sm:$0xff] %v2591_v5   ;;  %v1393_v23 = vadd.f32 %v2746_v58, %v1167_v21  ;;  %v1874_v58 = vpop.permute.xlu0 %1873 }
 0x19b   : > { %v1169_v15 = vpop.f32.mrf.mxu0  ;;  %v1400_v42 = vpop.f32.mrf.mxu1 }
 0x19c   : > { %v1938_v62 = vmul.f32 %v3579_v51, %v1393_v23  ;;  %v1889_v21 = vpop.permute.xlu1 %1888 }
 0x19d   : > { %v1172_v11 = vpop.f32.mrf.mxu0  ;;  %v3620_v25 = vpop.f32.mrf.mxu1 }
 0x19e   : > { %v2596_v22 = vpack.c.bf16 %v1938_v62, %v1937_v20  ;;  %v1398_v0 = vadd.f32 %v1397_v6, %v1172_v11 }
 0x19f   : > { %v1174_v61 = vpop.f32.mrf.mxu0  ;;  %v1413_v3 = vpop.f32.mrf.mxu1 }
 0x1a0   : > { %2660 = vst [vmem:[%s3542_s9 + $0x68] sm:$0xff] %v2596_v22   ;;  %v1939_v63 = vmul.f32 %v3589_v33, %v1398_v0 }
 0x1a1   : > { %v1175_v1 = vpop.f32.mrf.mxu0  ;;  %v3623_v32 = vpop.f32.mrf.mxu1 }
 0x1a2   : > { %v1401_v54 = vadd.f32 %v1400_v42, %v1175_v1 }
 0x1a3   : > { %v1177_v49 = vpop.f32.mrf.mxu0  ;;  %v1416_v53 = vpop.f32.mrf.mxu1 }
 0x1a4   : > { %v1940_v51 = vmul.f32 %v3587_v37, %v1401_v54 }
 0x1a5   : > { %v1180_v47 = vpop.f32.mrf.mxu0  ;;  %v2757_v48 = vpop.f32.mrf.mxu1 }
 0x1a6   : > { %v2601_v55 = vpack.c.bf16 %v1940_v51, %v1939_v63  ;;  %v1406_v52 = vadd.f32 %v2749_v43, %v1180_v47  ;;  %v1438_v46 = vadd.f32 %v2757_v48, %v3465_v28 }
 0x1a7   : > { %v1182_v19 = vpop.f32.mrf.mxu0  ;;  %v1429_v57 = vpop.f32.mrf.mxu1 }
 0x1a8   : > { %2661 = vst [vmem:[%s3542_s9 + $0x70] sm:$0xff] %v2601_v55   ;;  %v1430_v13 = vadd.f32 %v1429_v57, %v3455_v18  ;;  %v1941_v37 = vmul.f32 %v3598_v27, %v1406_v52  ;;  %v1949_v43 = vmul.f32 %v1864_v31, %v1438_v46  ;;  %v1884_v18 = vpop.permute.xlu0 %1883 }
 0x1a9   : > { %v1183_v14 = vpop.f32.mrf.mxu0  ;;  %v2758_v4 = vpop.f32.mrf.mxu1 }
 0x1aa   : > { %v1409_v30 = vadd.f32 %v2750_v10, %v1183_v14  ;;  %v1441_v33 = vadd.f32 %v2758_v4, %v3471_v34  ;;  %v1947_v10 = vmul.f32 %v1854_v59, %v1430_v13 }
 0x1ab   : > { %v1185_v38 = vpop.f32.mrf.mxu0  ;;  %v1432_v9 = vpop.f32.mrf.mxu1 }
 0x1ac   : > { %v1942_v17 = vmul.f32 %v3596_v35, %v1409_v30  ;;  %v1950_v6 = vmul.f32 %v1869_v41, %v1441_v33  ;;  %v1433_v5 = vadd.f32 %v1432_v9, %v3463_v24  ;;  %v1894_v41 = vpop.permute.xlu0 %1893 }
 0x1ad   : > { %v1188_v28 = vpop.f32.mrf.mxu0  ;;  %v2761_v7 = vpop.f32.mrf.mxu1 }
 0x1ae   : > { %v2606_v23 = vpack.c.bf16 %v1942_v17, %v1941_v37  ;;  %v2626_v34 = vpack.c.bf16 %v1950_v6, %v1949_v43  ;;  %v1948_v15 = vmul.f32 %v1859_v16, %v1433_v5  ;;  %v1414_v27 = vadd.f32 %v1413_v3, %v1188_v28  ;;  %v1899_v3 = vpop.permute.xlu1 %1898 }
 0x1af   : > { %v1190_v42 = vpop.f32.mrf.mxu0  ;;  %v1445_v20 = vpop.f32.mrf.mxu1  ;;  %v1454_v35 = vadd.f32 %v2761_v7, %v3489_v50 }
 0x1b0   : > { %2662 = vst [vmem:[%s3542_s9 + $0x78] sm:$0xff] %v2606_v23   ;;  %2666 = vst [vmem:[%s3542_s9 + $0x98] sm:$0xff] %v2626_v34   ;;  %v2621_v62 = vpack.c.bf16 %v1948_v15, %v1947_v10  ;;  %v1446_v24 = vadd.f32 %v1445_v20, %v3479_v40  ;;  %v1943_v59 = vmul.f32 %v3607_v29, %v1414_v27  ;;  %v1904_v46 = vpop.permute.xlu0 %1903 }
 0x1b1   : > { %v1191_v11 = vpop.f32.mrf.mxu0  ;;  %v2762_v22 = vpop.f32.mrf.mxu1  ;;  %v1953_v31 = vmul.f32 %v1884_v18, %v1454_v35 }
 0x1b2   : > { %2665 = vst [vmem:[%s3542_s9 + $0x90] sm:$0xff] %v2621_v62   ;;  %v1417_v61 = vadd.f32 %v1416_v53, %v1191_v11  ;;  %v1457_v0 = vadd.f32 %v2762_v22, %v3495_v56  ;;  %v1951_v40 = vmul.f32 %v1874_v58, %v1446_v24  ;;  %v1909_v57 = vpop.permute.xlu1 %1908 }
 0x1b3   : > { %v1193_v1 = vpop.f32.mrf.mxu0  ;;  %v1448_v16 = vpop.f32.mrf.mxu1 }
 0x1b4   : > { %v1944_v54 = vmul.f32 %v3605_v39, %v1417_v61  ;;  %v1954_v50 = vmul.f32 %v1889_v21, %v1457_v0  ;;  %v1449_v49 = vadd.f32 %v1448_v16, %v3483_v44 }
 0x1b5   : > { %v1196_v63 = vpop.f32.mrf.mxu0  ;;  %v2765_v51 = vpop.f32.mrf.mxu1 }
 0x1b6   : > { %v2611_v53 = vpack.c.bf16 %v1944_v54, %v1943_v59  ;;  %v2636_v56 = vpack.c.bf16 %v1954_v50, %v1953_v31  ;;  %v1952_v47 = vmul.f32 %v1879_v45, %v1449_v49  ;;  %v1422_v29 = vadd.f32 %v3620_v25, %v1196_v63 }
 0x1b7   : > { %v1198_v48 = vpop.f32.mrf.mxu0  ;;  %v1461_v55 = vpop.f32.mrf.mxu1  ;;  %v1470_v39 = vadd.f32 %v2765_v51, %v3513_v8 }
 0x1b8   : > { %2663 = vst [vmem:[%s3542_s9 + $0x80] sm:$0xff] %v2611_v53   ;;  %2668 = vst [vmem:[%s3542_s9 + $0xa8] sm:$0xff] %v2636_v56   ;;  %v2631_v52 = vpack.c.bf16 %v1952_v47, %v1951_v40  ;;  %v1462_v58 = vadd.f32 %v1461_v55, %v3499_v60  ;;  %v1945_v14 = vmul.f32 %v3613_v26, %v1422_v29 }
 0x1b9   : > { %v1199_v19 = vpop.f32.mrf.mxu0  ;;  %v2766_v44 = vpop.f32.mrf.mxu1  ;;  %v1957_v8 = vmul.f32 %v1904_v46, %v1470_v39 }
 0x1ba   : > { %2667 = vst [vmem:[%s3542_s9 + $0xa0] sm:$0xff] %v2631_v52   ;;  %v1425_v45 = vadd.f32 %v3623_v32, %v1199_v19  ;;  %v1473_v25 = vadd.f32 %v2766_v44, %v3517_v12  ;;  %v1955_v32 = vmul.f32 %v1894_v41, %v1462_v58 }
 0x1bb   : > { %v1201_v4 = vpop.f32.mrf.mxu0  ;;  %v1464_v13 = vpop.f32.mrf.mxu1 }
 0x1bc   : > { %v1946_v30 = vmul.f32 %v3611_v36, %v1425_v45  ;;  %v1958_v33 = vmul.f32 %v1909_v57, %v1473_v25  ;;  %v1465_v60 = vadd.f32 %v1464_v13, %v3507_v2 }
 0x1be   : > { %v2616_v37 = vpack.c.bf16 %v1946_v30, %v1945_v14  ;;  %v2646_v12 = vpack.c.bf16 %v1958_v33, %v1957_v8  ;;  %v1956_v38 = vmul.f32 %v1899_v3, %v1465_v60 }
 0x1c0   : > { %2664 = vst [vmem:[%s3542_s9 + $0x88] sm:$0xff] %v2616_v37   ;;  %2670 = vst [vmem:[%s3542_s9 + $0xb8] sm:$0xff] %v2646_v12   ;;  %v2641_v36 = vpack.c.bf16 %v1956_v38, %v1955_v32 }
 0x1c2   : > { %2669 = vst [vmem:[%s3542_s9 + $0xb0] sm:$0xff] %v2641_v36  }
 0x1c3   : > { %3034 = shalt.err (!%p3031_p6)
}
 0x1c4   : > { %s3035_s24 = scalar_lea.hbm %s3659_s4, 3072  ;;  %s3039_s18 = scalar_lea.hbm %s3714_s3, 9216 }
 0x1c5   : > { %p3036_p7 = scmp.ne.s32.totalorder %s3659_s4, %s3035_s24  ;;  %p3040_p0 = scmp.lt.s32.totalorder %s3659_s4, %s3714_s3 }
 0x1c6   : > { %p3041_p8 = scmp.lt.s32.totalorder %s3039_s18, %s3035_s24 }
 0x1c7   : > { %p3037_p10 = pnand %p3036_p7, %p3181_p9 }
 0x1c8   : > { %p3042_p13 = por %p3041_p8, %p3040_p0 }
 0x1c9   : > { %p3038_p12 = pneg %p3037_p10 }
 0x1cb   : > { %p3043_p1 = pnand %p3042_p13, %p3038_p12 }
 0x1cd   : > { %3046 = shalt.err (!%p3043_p1)
}
 0x1ce   : > { %s3108_s9 = smov 64   ;;  %s3109_s21 = smov 4  }
 0x1cf   : > { %2805 = dma.vmem_to_hbm [thread:$0]  (%p3181_p9), %s3661_s22, 3072, %s3659_s4, %s2200_s15, %s3108_s9, %s3108_s9, %s3109_s21  }
 0x1d0 PF: > { %p2817_p2 = scmp.ge.s32.totalorder %s3101_s17, 2  ;;  %s2228_s23 = sand.u32 1, %s3081_s12  }
 0x1d1   : > { %s2229_s29 = scalar_lea.sflag [#allocation5], %s2228_s23 }
 0x1d2   : > { %p2812_p3 = pnand %p2817_p2, %p3188_p11 }
 0x1d4   : > { %p2813_p4 = pneg %p2812_p3 }
 0x1d6   : > { %3076 = dma.done.wait (%p2813_p4), %s2229_s29, 3072  }
 0x1d7   : > { %3078 = vsyncadd (%p2813_p4), %s2229_s29, 4294964224  ;;  %s19_s17 = sadd.s32 1, %s3101_s17   ;;  %s3720_s12 = smov %s3085_s13 }
 0x1d8   : > { %p16_p5 = scmp.ge.s32.totalorder %s19_s17, 5   ;;  %s3721_s13 = smov %s3089_s14 }
 0x1d9   : > { %s3722_s14 = smov %s3186_s26  ;;  %s3723_s15 = smov %s3097_s16 }
 0x1da   : > { %s3724_s16 = smov %s3726_s20  ;;  %18 = sbr.rel (!%p16_p5) target bundleno = 6 (0x6), region = 91 }
 0x1df   :  { %2234 = vsyncpa [#allocation4], 1 }
 0x1e0   :  { %2236 = vsyncpa [#allocation4 + $0x1], 1 }
 0x1e1   :  { %2237 = vsyncpa [#allocation5], 1 }
 0x1e2   :  { %2239 = vsyncpa [#allocation5 + $0x1], 1 }

</bundles_post_ra>
